<compile_context>
chip_gen: v5e
topology: v5e:2x2
jax: 0.10.0
libtpu: 0.0.40
codegen_flags: <defaults>
</compile_context>

<pallas_src>
import jax
import jax.numpy as jnp
from jax.experimental import pallas as pl
from jax.experimental.pallas import tpu as pltpu

IN_DIM = 28 * 28      # 784
HID_DIM = 200
OUT_DIM = 10

# MXU / lane friendly padded dims (multiples of 128).
IN_PAD = 896          # 7 * 128
HID_PAD = 256         # 2 * 128
OUT_PAD = 128         # 1 * 128


def _round_up(n, m):
    return ((n + m - 1) // m) * m


def _mlp_kernel(x_ref, w0_ref, b0_ref, w1_ref, b1_ref, w2_ref, b2_ref, o_ref):
    # bf16 operands on the MXU, f32 accumulation, f32 bias-add + sigmoid.
    x = x_ref[...].astype(jnp.bfloat16)
    h0 = jnp.dot(x, w0_ref[...], preferred_element_type=jnp.float32)
    h0 = jax.nn.sigmoid(h0 + b0_ref[...])
    h1 = jnp.dot(h0.astype(jnp.bfloat16), w1_ref[...],
                 preferred_element_type=jnp.float32)
    h1 = jax.nn.sigmoid(h1 + b1_ref[...])
    h2 = jnp.dot(h1.astype(jnp.bfloat16), w2_ref[...],
                 preferred_element_type=jnp.float32)
    o_ref[...] = jax.nn.sigmoid(h2 + b2_ref[...]).astype(o_ref.dtype)


def neuronka_forward(x, params, *, max_block_b=512):
    """x: (B, 784) float32.  params: output of prepare_params (padded, bf16 W)."""
    B = x.shape[0]
    # Batch tile: multiple of 8 sublanes, capped at max_block_b
    # (512 is safe for the 32 MiB default scoped VMEM on all generations).
    tb = min(max_block_b, _round_up(B, 8))
    b_pad = _round_up(B, tb)

    # Pad batch + feature dims once in the wrapper (padded lanes are zeros).
    x_p = jnp.pad(x, ((0, b_pad - B), (0, IN_PAD - IN_DIM)))

    w0, b0, w1, b1, w2, b2 = (params[k] for k in ("w0", "b0", "w1",
                                                  "b1", "w2", "b2"))

    # Grid-invariant operands: constant index_map -> DMA'd once, VMEM-resident.
    const = lambda a: pl.BlockSpec(a.shape, lambda i: (0, 0))

    flops = 2 * b_pad * (IN_PAD * HID_PAD + HID_PAD * HID_PAD + HID_PAD * OUT_PAD)
    transcendentals = b_pad * (HID_PAD + HID_PAD + OUT_PAD)
    bytes_accessed = (x_p.size * x_p.dtype.itemsize
                      + sum(a.size * a.dtype.itemsize
                            for a in (w0, b0, w1, b1, w2, b2))
                      + b_pad * OUT_PAD * 4)

    out_p = pl.pallas_call(
        _mlp_kernel,
        out_shape=jax.ShapeDtypeStruct((b_pad, OUT_PAD), jnp.float32),
        grid=(b_pad // tb,),
        in_specs=[pl.BlockSpec((tb, IN_PAD), lambda i: (i, 0)),
                  const(w0), const(b0),
                  const(w1), const(b1),
                  const(w2), const(b2)],
        out_specs=pl.BlockSpec((tb, OUT_PAD), lambda i: (i, 0)),
        compiler_params=pltpu.CompilerParams(
            dimension_semantics=("parallel",)),
        cost_estimate=pl.CostEstimate(flops=flops,
                                      transcendentals=transcendentals,
                                      bytes_accessed=bytes_accessed),
    )(x_p, w0, b0, w1, b1, w2, b2)

    # Strip batch padding and the 118 padded output lanes.
    return out_p[:B, :OUT_DIM]


def init_params(key):
    """f32 master params mimicking torch.nn.Linear default init
    (U[-1/sqrt(fan_in), 1/sqrt(fan_in)]).  Weights stored transposed:
    (in_features, out_features)."""
    ks = jax.random.split(key, 6)

    def layer(kw, kb, fan_in, fan_out):
        bound = 1.0 / jnp.sqrt(fan_in)
        w = jax.random.uniform(kw, (fan_in, fan_out), jnp.float32, -bound, bound)
        b = jax.random.uniform(kb, (1, fan_out), jnp.float32, -bound, bound)
        return w, b

    w0, b0 = layer(ks[0], ks[1], IN_DIM, HID_DIM)
    w1, b1 = layer(ks[2], ks[3], HID_DIM, HID_DIM)
    w2, b2 = layer(ks[4], ks[5], HID_DIM, OUT_DIM)
    return dict(w0=w0, b0=b0, w1=w1, b1=b1, w2=w2, b2=b2)


def prepare_params(p):
    """Zero-pad every dim to its lane-aligned size and cast weights to bf16.
    Padded rows of the *next* layer's weight are zero, so the sigmoid(0)=0.5
    values produced in padded hidden columns contribute nothing."""
    def pad2(a, rows, cols):
        return jnp.pad(a, ((0, rows - a.shape[0]), (0, cols - a.shape[1])))

    return dict(
        w0=pad2(p["w0"], IN_PAD, HID_PAD).astype(jnp.bfloat16),
        b0=pad2(p["b0"], 1, HID_PAD),
        w1=pad2(p["w1"], HID_PAD, HID_PAD).astype(jnp.bfloat16),
        b1=pad2(p["b1"], 1, HID_PAD),
        w2=pad2(p["w2"], HID_PAD, OUT_PAD).astype(jnp.bfloat16),
        b2=pad2(p["b2"], 1, OUT_PAD),
    )


def reference_forward_matched(x, pp):
    """Pure-JAX reference mirroring the kernel's numerical path
    (bf16 operands, f32 accumulation, f32 sigmoid, padded dims)."""
    xb = jnp.pad(x, ((0, 0), (0, IN_PAD - IN_DIM))).astype(jnp.bfloat16)
    h0 = jax.nn.sigmoid(
        jnp.dot(xb, pp["w0"], preferred_element_type=jnp.float32) + pp["b0"])
    h1 = jax.nn.sigmoid(
        jnp.dot(h0.astype(jnp.bfloat16), pp["w1"],
                preferred_element_type=jnp.float32) + pp["b1"])
    h2 = jnp.dot(h1.astype(jnp.bfloat16), pp["w2"],
                 preferred_element_type=jnp.float32) + pp["b2"]
    return jax.nn.sigmoid(h2)[:, :OUT_DIM]


def reference_forward_f32(x, p):
    """Full-precision reference on the original (unpadded) weights."""
    h0 = jax.nn.sigmoid(x @ p["w0"] + p["b0"])
    h1 = jax.nn.sigmoid(h0 @ p["w1"] + p["b1"])
    return jax.nn.sigmoid(h1 @ p["w2"] + p["b2"])


if __name__ == "__main__":
    key = jax.random.PRNGKey(0)
    k_x, k_p = jax.random.split(key)

    B = 8  # small batch of flattened 28x28 "images"
    x = jax.random.normal(k_x, (B, IN_DIM), jnp.float32)

    master = init_params(k_p)
    params = prepare_params(master)

    out = neuronka_forward(x, params)
    out = jax.block_until_ready(out)

    assert out.shape == (B, OUT_DIM)

    # Exact-path check (same bf16 rounding as the kernel).
    ref_matched = reference_forward_matched(x, params)
    assert jnp.allclose(out, ref_matched, atol=1e-4, rtol=1e-4), (
        "matched-path mismatch:", float(jnp.max(jnp.abs(out - ref_matched))))

    # Semantic check against the original f32 module (bf16 quantization bound).
    ref_f32 = reference_forward_f32(x, master)
    assert jnp.allclose(out, ref_f32, atol=3e-2, rtol=0.0), (
        "f32-reference mismatch:", float(jnp.max(jnp.abs(out - ref_f32))))

    print("KERNEL_OK")
</pallas_src>

<mosaic_0001>
module attributes {stable_mosaic.version = 11 : i64} {
  func.func @_mlp_kernel(%arg0: i32, %arg1: memref<8x896xf32, #tpu.memory_space<vmem>>, %arg2: memref<896x256xbf16, #tpu.memory_space<vmem>>, %arg3: memref<1x256xf32, #tpu.memory_space<vmem>>, %arg4: memref<256x256xbf16, #tpu.memory_space<vmem>>, %arg5: memref<1x256xf32, #tpu.memory_space<vmem>>, %arg6: memref<256x128xbf16, #tpu.memory_space<vmem>>, %arg7: memref<1x128xf32, #tpu.memory_space<vmem>>, %arg8: memref<8x128xf32, #tpu.memory_space<vmem>>) attributes {dimension_semantics = [#tpu.dimension_semantics<parallel>], iteration_bounds = array<i64: 1>, scalar_prefetch = 0 : i64, scratch_operands = 0 : i64, tpu.core_type = #tpu.core_type<tc>, window_params = [{transform_indices = @transform_0, window_bounds = array<i64: 8, 896>}, {pipeline_mode = #tpu.pipeline_mode<synchronous>, transform_indices = @transform_1, window_bounds = array<i64: 896, 256>}, {pipeline_mode = #tpu.pipeline_mode<synchronous>, transform_indices = @transform_2, window_bounds = array<i64: 1, 256>}, {pipeline_mode = #tpu.pipeline_mode<synchronous>, transform_indices = @transform_3, window_bounds = array<i64: 256, 256>}, {pipeline_mode = #tpu.pipeline_mode<synchronous>, transform_indices = @transform_4, window_bounds = array<i64: 1, 256>}, {pipeline_mode = #tpu.pipeline_mode<synchronous>, transform_indices = @transform_5, window_bounds = array<i64: 256, 128>}, {pipeline_mode = #tpu.pipeline_mode<synchronous>, transform_indices = @transform_6, window_bounds = array<i64: 1, 128>}, {transform_indices = @transform_7, window_bounds = array<i64: 8, 128>}]} {
    %c0 = arith.constant 0 : index
    %c0_0 = arith.constant 0 : index
    %0 = vector.load %arg1[%c0, %c0_0] : memref<8x896xf32, #tpu.memory_space<vmem>>, vector<8x896xf32>
    %1 = arith.truncf %0 : vector<8x896xf32> to vector<8x896xbf16>
    %c0_1 = arith.constant 0 : index
    %c0_2 = arith.constant 0 : index
    %2 = vector.load %arg2[%c0_1, %c0_2] : memref<896x256xbf16, #tpu.memory_space<vmem>>, vector<896x256xbf16>
    %cst = arith.constant dense<0.000000e+00> : vector<8x256xf32>
    %3 = tpu.matmul %1, %2, %cst {dimension_numbers = #tpu.dot_dimension_numbers<[1], [0], [0], [1], [0, 0, 1, 1], [], []>} : vector<8x896xbf16>, vector<896x256xbf16>, vector<8x256xf32> -> vector<8x256xf32>
    %c0_3 = arith.constant 0 : index
    %c0_4 = arith.constant 0 : index
    %4 = vector.load %arg3[%c0_3, %c0_4] : memref<1x256xf32, #tpu.memory_space<vmem>>, vector<1x256xf32>
    %5 = vector.broadcast %4 : vector<1x256xf32> to vector<8x256xf32>
    %6 = arith.addf %3, %5 : vector<8x256xf32>
    %7 = arith.negf %6 : vector<8x256xf32>
    %8 = math.exp %7 : vector<8x256xf32>
    %cst_5 = arith.constant 1.000000e+00 : f32
    %9 = vector.broadcast %cst_5 : f32 to vector<8x256xf32>
    %10 = arith.addf %9, %8 : vector<8x256xf32>
    %11 = arith.divf %9, %10 : vector<8x256xf32>
    %12 = arith.truncf %11 : vector<8x256xf32> to vector<8x256xbf16>
    %c0_6 = arith.constant 0 : index
    %c0_7 = arith.constant 0 : index
    %13 = vector.load %arg4[%c0_6, %c0_7] : memref<256x256xbf16, #tpu.memory_space<vmem>>, vector<256x256xbf16>
    %cst_8 = arith.constant dense<0.000000e+00> : vector<8x256xf32>
    %14 = tpu.matmul %12, %13, %cst_8 {dimension_numbers = #tpu.dot_dimension_numbers<[1], [0], [0], [1], [0, 0, 1, 1], [], []>} : vector<8x256xbf16>, vector<256x256xbf16>, vector<8x256xf32> -> vector<8x256xf32>
    %c0_9 = arith.constant 0 : index
    %c0_10 = arith.constant 0 : index
    %15 = vector.load %arg5[%c0_9, %c0_10] : memref<1x256xf32, #tpu.memory_space<vmem>>, vector<1x256xf32>
    %16 = vector.broadcast %15 : vector<1x256xf32> to vector<8x256xf32>
    %17 = arith.addf %14, %16 : vector<8x256xf32>
    %18 = arith.negf %17 : vector<8x256xf32>
    %19 = math.exp %18 : vector<8x256xf32>
    %cst_11 = arith.constant 1.000000e+00 : f32
    %20 = vector.broadcast %cst_11 : f32 to vector<8x256xf32>
    %21 = arith.addf %20, %19 : vector<8x256xf32>
    %22 = arith.divf %20, %21 : vector<8x256xf32>
    %23 = arith.truncf %22 : vector<8x256xf32> to vector<8x256xbf16>
    %c0_12 = arith.constant 0 : index
    %c0_13 = arith.constant 0 : index
    %24 = vector.load %arg6[%c0_12, %c0_13] : memref<256x128xbf16, #tpu.memory_space<vmem>>, vector<256x128xbf16>
    %cst_14 = arith.constant dense<0.000000e+00> : vector<8x128xf32>
    %25 = tpu.matmul %23, %24, %cst_14 {dimension_numbers = #tpu.dot_dimension_numbers<[1], [0], [0], [1], [0, 0, 1, 1], [], []>} : vector<8x256xbf16>, vector<256x128xbf16>, vector<8x128xf32> -> vector<8x128xf32>
    %c0_15 = arith.constant 0 : index
    %c0_16 = arith.constant 0 : index
    %26 = vector.load %arg7[%c0_15, %c0_16] : memref<1x128xf32, #tpu.memory_space<vmem>>, vector<1x128xf32>
    %27 = vector.broadcast %26 : vector<1x128xf32> to vector<8x128xf32>
    %28 = arith.addf %25, %27 : vector<8x128xf32>
    %29 = arith.negf %28 : vector<8x128xf32>
    %30 = math.exp %29 : vector<8x128xf32>
    %cst_17 = arith.constant 1.000000e+00 : f32
    %31 = vector.broadcast %cst_17 : f32 to vector<8x128xf32>
    %32 = arith.addf %31, %30 : vector<8x128xf32>
    %33 = arith.divf %31, %32 : vector<8x128xf32>
    %c0_18 = arith.constant 0 : index
    %c0_19 = arith.constant 0 : index
    %34 = vector.load %arg8[%c0_18, %c0_19] : memref<8x128xf32, #tpu.memory_space<vmem>>, vector<8x128xf32>
    tpu.vector_store %arg8[%c0_18, %c0_19], %33 {strides = array<i32>} : memref<8x128xf32, #tpu.memory_space<vmem>>, vector<8x128xf32>,
    return
  }
  func.func @transform_0(%arg0: i32) -> (i32, i32) {
    %c0_i32 = arith.constant 0 : i32
    %c0_i32_0 = arith.constant 0 : i32
    return %arg0, %c0_i32 : i32, i32
  }
  func.func @transform_1(%arg0: i32) -> (i32, i32) {
    %c0_i32 = arith.constant 0 : i32
    %c0_i32_0 = arith.constant 0 : i32
    %c0_i32_1 = arith.constant 0 : i32
    return %c0_i32, %c0_i32_0 : i32, i32
  }
  func.func @transform_2(%arg0: i32) -> (i32, i32) {
    %c0_i32 = arith.constant 0 : i32
    %c0_i32_0 = arith.constant 0 : i32
    %c0_i32_1 = arith.constant 0 : i32
    return %c0_i32, %c0_i32_0 : i32, i32
  }
  func.func @transform_3(%arg0: i32) -> (i32, i32) {
    %c0_i32 = arith.constant 0 : i32
    %c0_i32_0 = arith.constant 0 : i32
    %c0_i32_1 = arith.constant 0 : i32
    return %c0_i32, %c0_i32_0 : i32, i32
  }
  func.func @transform_4(%arg0: i32) -> (i32, i32) {
    %c0_i32 = arith.constant 0 : i32
    %c0_i32_0 = arith.constant 0 : i32
    %c0_i32_1 = arith.constant 0 : i32
    return %c0_i32, %c0_i32_0 : i32, i32
  }
  func.func @transform_5(%arg0: i32) -> (i32, i32) {
    %c0_i32 = arith.constant 0 : i32
    %c0_i32_0 = arith.constant 0 : i32
    %c0_i32_1 = arith.constant 0 : i32
    return %c0_i32, %c0_i32_0 : i32, i32
  }
  func.func @transform_6(%arg0: i32) -> (i32, i32) {
    %c0_i32 = arith.constant 0 : i32
    %c0_i32_0 = arith.constant 0 : i32
    %c0_i32_1 = arith.constant 0 : i32
    return %c0_i32, %c0_i32_0 : i32, i32
  }
  func.func @transform_7(%arg0: i32) -> (i32, i32) {
    %c0_i32 = arith.constant 0 : i32
    %c0_i32_0 = arith.constant 0 : i32
    return %arg0, %c0_i32 : i32, i32
  }
}

</mosaic_0001>

<bundles_post_ra>
// kernel: tpu_custom_call.1
= control target key start
LH: loop header
LB: loop body
LE: loop exit
PB: predicated region body
PF: predicated region fallthrough
CT: control target
= control target key end

     0   :  { %12 = vsyncpa [#allocation3], 0  ;;  %s2596_s0 = inlined_call_operand.hbm [shape: f32[8,896], index: 0, kind: input, shape index: {}]   ;;  %s2597_s1 = inlined_call_operand.hbm [shape: bf16[896,256], index: 1, kind: input, shape index: {}]   ;;  %s2598_s2 = inlined_call_operand.hbm [shape: f32[1,256], index: 2, kind: input, shape index: {}]   ;;  %s2599_s3 = inlined_call_operand.hbm [shape: bf16[256,256], index: 3, kind: input, shape index: {}]   ;;  %s2600_s4 = inlined_call_operand.vmem [shape: f32[1,256], index: 4, kind: input, shape index: {}]   ;;  %s2601_s5 = inlined_call_operand.hbm [shape: bf16[256,128], index: 5, kind: input, shape index: {}]   ;;  %s2602_s6 = inlined_call_operand.vmem [shape: f32[1,128], index: 6, kind: input, shape index: {}]   ;;  %s2603_s7 = inlined_call_operand.hbm [shape: f32[8,128], index: 7, kind: output, shape index: {}]  }
   0x1   :  { %13 = vsyncpa [#allocation6], 0 }
   0x2   :  { %14 = vsyncpa [#allocation9], 0  ;;  %s31_s26 = sshll.u32 %s2597_s1, 4  ;;  %s32_s26 = int_to_ptr.hbm [resolvable:$true] %s31_s26 }
   0x3   :  { %15 = vsyncpa [#allocation4], 0  ;;  %s2490_s27 = smov [#allocation5]   ;;  %s55_s8 = sshll.u32 %s2599_s3, 4  ;;  %s56_s8 = int_to_ptr.hbm [resolvable:$true] %s55_s8 }
   0x4   :  { %s33_s28 = sshll.u32 %s2490_s27, 4  ;;  %s2491_s9 = smov 128   ;;  %s34_s28 = int_to_ptr.vmem [resolvable:$true] %s33_s28 }
   0x5   :  { %s2492_s10 = smov 8   ;;  %s2493_s11 = smov [#allocation8]  }
   0x6   :  { %39 = dma.hbm_to_vmem [thread:$0]  %s32_s26, 14336, %s34_s28, [#allocation6], %s2491_s9, %s2491_s9, %s2492_s10  }
   0x7   :  { %s57_s12 = sshll.u32 %s2493_s11, 4  ;;  %s21_s15 = sshll.u32 %s2596_s0, 4  ;;  %s58_s12 = int_to_ptr.vmem [resolvable:$true] %s57_s12  ;;  %s22_s15 = int_to_ptr.hbm [resolvable:$true] %s21_s15 }
   0x8   :  { %63 = dma.hbm_to_vmem [thread:$0]  %s56_s8, 4096, %s58_s12, [#allocation9], %s2491_s9, %s2491_s9, %s2492_s10  }
   0x9   :  { %s45_s17 = sshll.u32 %s2598_s2, 4  ;;  %s2494_s18 = smov [#allocation2]   ;;  %s46_s17 = int_to_ptr.hbm [resolvable:$true] %s45_s17 }
   0xa   :  { %s23_s19 = sshll.u32 %s2494_s18, 4  ;;  %s2495_s3 = smov [#allocation7]   ;;  %s24_s19 = int_to_ptr.vmem [resolvable:$true] %s23_s19 }
   0xb   :  { %26 = dma.hbm_to_vmem [thread:$0]  %s22_s15, 896, %s24_s19, [#allocation3]  }
   0xc   :  { %s47_s20 = sshll.u32 %s2495_s3, 4  ;;  %s70_s23 = sshll.u32 %s2601_s5, 4  ;;  %s48_s20 = int_to_ptr.vmem [resolvable:$true] %s47_s20  ;;  %s71_s23 = int_to_ptr.hbm [resolvable:$true] %s70_s23 }
   0xd   :  { %50 = dma.hbm_to_vmem [thread:$0]  %s46_s17, 32, %s48_s20, [#allocation6]  }
   0xe   :  { %s2496_s0 = smov [#allocation10]   ;;  %s2497_s25 = smov 64  }
   0xf   :  { %s72_s24 = sshll.u32 %s2496_s0, 4  ;;  %s2498_s26 = smov 4   ;;  %s73_s24 = int_to_ptr.vmem [resolvable:$true] %s72_s24 }
  0x10   :  { %78 = dma.hbm_to_vmem [thread:$0]  %s71_s23, 2048, %s73_s24, [#allocation9], %s2497_s25, %s2497_s25, %s2498_s26  }
  0x11   :  { %2482 = dma.done.wait [#allocation3], 896  }
  0x12   :  { %2483 = vsyncadd [#allocation3], 4294966400 }
  0x13   :  { %2484 = dma.done.wait [#allocation6], 14368  }
  0x14   :  { %2485 = vsyncadd [#allocation6], 4294952928 }
  0x15   :  { %2486 = dma.done.wait [#allocation9], 6144  }
  0x16   :  { %2487 = vsyncadd [#allocation9], 4294961152  ;;  %v1560_v0 = vld [vmem:[#allocation5 + $0x70] sm:$0xf]  ;;  %v2162_v1 = vld [vmem:[#allocation5 + $0x74] sm:$0xf0] }
  0x17   :  { %v1624_v2 = vld [vmem:[#allocation5 + $0xf0] sm:$0xf]  ;;  %v1561_v3 = vor.u32 %v2162_v1, %v1560_v0  ;;  %v2178_v4 = vld [vmem:[#allocation5 + $0xf4] sm:$0xf0]  ;;  %v1552_v9 = vld [vmem:[#allocation5 + $0x60] sm:$0xf] }
  0x18   :  { %v1688_v5 = vld [vmem:[#allocation5 + $0x170] sm:$0xf]  ;;  %v2194_v6 = vld [vmem:[#allocation5 + $0x174] sm:$0xf0]  ;;  %v1625_v7 = vor.u32 %v2178_v4, %v1624_v2  ;;  %v2160_v10 = vld [vmem:[#allocation5 + $0x64] sm:$0xf0] }
  0x19   :  { %v1689_v8 = vor.u32 %v2194_v6, %v1688_v5  ;;  %v1616_v11 = vld [vmem:[#allocation5 + $0xe0] sm:$0xf]  ;;  %793 = vmatpush.bf16.msra.mxu0 %v1561_v3  ;;  %v1553_v12 = vor.u32 %v2160_v10, %v1552_v9  ;;  %v2176_v13 = vld [vmem:[#allocation5 + $0xe4] sm:$0xf0]  ;;  %v1544_v18 = vld [vmem:[#allocation5 + $0x50] sm:$0xf] }
  0x1a   :  { %v1680_v14 = vld [vmem:[#allocation5 + $0x160] sm:$0xf]  ;;  %v2192_v15 = vld [vmem:[#allocation5 + $0x164] sm:$0xf0]  ;;  %806 = vmatpush.bf16.msra.mxu1 %v1625_v7  ;;  %v1617_v16 = vor.u32 %v2176_v13, %v1616_v11  ;;  %v2158_v19 = vld [vmem:[#allocation5 + $0x54] sm:$0xf0] }
  0x1b   :  { %819 = vmatpush.bf16.msra.mxu2 %v1689_v8  ;;  %v1681_v17 = vor.u32 %v2192_v15, %v1680_v14  ;;  %v1608_v20 = vld [vmem:[#allocation5 + $0xd0] sm:$0xf]  ;;  %v2174_v21 = vld [vmem:[#allocation5 + $0xd4] sm:$0xf0]  ;;  %v1545_v24 = vor.u32 %v2158_v19, %v1544_v18  ;;  %v1536_v25 = vld [vmem:[#allocation5 + $0x40] sm:$0xf] }
  0x1c   :  { %v1672_v22 = vld [vmem:[#allocation5 + $0x150] sm:$0xf]  ;;  %v2190_v23 = vld [vmem:[#allocation5 + $0x154] sm:$0xf0]  ;;  %v2156_v26 = vld [vmem:[#allocation5 + $0x44] sm:$0xf0]  ;;  %v1609_v27 = vor.u32 %v2174_v21, %v1608_v20 }
  0x1d   :  { %794 = vmatpush.bf16.msra.mxu0 %v1553_v12  ;;  %v1673_v28 = vor.u32 %v2190_v23, %v1672_v22  ;;  %v1600_v29 = vld [vmem:[#allocation5 + $0xc0] sm:$0xf]  ;;  %v1752_v30 = vld [vmem:[#allocation5 + $0x1f0] sm:$0xf]  ;;  %v2210_v31 = vld [vmem:[#allocation5 + $0x1f4] sm:$0xf0]  ;;  %v1537_v37 = vor.u32 %v2156_v26, %v1536_v25 }
  0x1e   :  { %807 = vmatpush.bf16.msra.mxu1 %v1617_v16  ;;  %v2172_v32 = vld [vmem:[#allocation5 + $0xc4] sm:$0xf0]  ;;  %v1664_v33 = vld [vmem:[#allocation5 + $0x140] sm:$0xf]  ;;  %v1753_v35 = vor.u32 %v2210_v31, %v1752_v30  ;;  %v1528_v38 = vld [vmem:[#allocation5 + $0x30] sm:$0xf] }
  0x1f   :  { %820 = vmatpush.bf16.msra.mxu2 %v1681_v17  ;;  %v2188_v34 = vld [vmem:[#allocation5 + $0x144] sm:$0xf0]  ;;  %v1744_v36 = vld [vmem:[#allocation5 + $0x1e0] sm:$0xf]  ;;  %v2154_v39 = vld [vmem:[#allocation5 + $0x34] sm:$0xf0]  ;;  %v1601_v41 = vor.u32 %v2172_v32, %v1600_v29 }
  0x20   :  { %832 = vmatpush.bf16.msra.mxu3 %v1753_v35  ;;  %v2208_v40 = vld [vmem:[#allocation5 + $0x1e4] sm:$0xf0]  ;;  %v1665_v42 = vor.u32 %v2188_v34, %v1664_v33  ;;  %v1592_v43 = vld [vmem:[#allocation5 + $0xb0] sm:$0xf]  ;;  %v2170_v44 = vld [vmem:[#allocation5 + $0xb4] sm:$0xf0]  ;;  %v1529_v50 = vor.u32 %v2154_v39, %v1528_v38 }
  0x21   :  { %795 = vmatpush.bf16.msra.mxu0 %v1545_v24  ;;  %v1656_v45 = vld [vmem:[#allocation5 + $0x130] sm:$0xf]  ;;  %v1745_v46 = vor.u32 %v2208_v40, %v1744_v36  ;;  %v2186_v47 = vld [vmem:[#allocation5 + $0x134] sm:$0xf0]  ;;  %v1520_v51 = vld [vmem:[#allocation5 + $0x20] sm:$0xf]  ;;  %v1593_v54 = vor.u32 %v2170_v44, %v1592_v43 }
  0x22   :  { %808 = vmatpush.bf16.msra.mxu1 %v1609_v27  ;;  %v1736_v48 = vld [vmem:[#allocation5 + $0x1d0] sm:$0xf]  ;;  %v2206_v49 = vld [vmem:[#allocation5 + $0x1d4] sm:$0xf0]  ;;  %v2152_v52 = vld [vmem:[#allocation5 + $0x24] sm:$0xf0]  ;;  %v1657_v55 = vor.u32 %v2186_v47, %v1656_v45 }
  0x23   :  { %821 = vmatpush.bf16.msra.mxu2 %v1673_v28  ;;  %v1737_v53 = vor.u32 %v2206_v49, %v1736_v48  ;;  %v1584_v56 = vld [vmem:[#allocation5 + $0xa0] sm:$0xf]  ;;  %v2204_v58 = vld [vmem:[#allocation5 + $0x1c4] sm:$0xf0]  ;;  %v1521_v62 = vor.u32 %v2152_v52, %v1520_v51  ;;  %v1512_v63 = vld [vmem:[#allocation5 + $0x10] sm:$0xf] }
  0x24   :  { %833 = vmatpush.bf16.msra.mxu3 %v1745_v46  ;;  %v1728_v57 = vld [vmem:[#allocation5 + $0x1c0] sm:$0xf]  ;;  %v2168_v59 = vld [vmem:[#allocation5 + $0xa4] sm:$0xf0]  ;;  %v2150_v0 = vld [vmem:[#allocation5 + $0x14] sm:$0xf0] }
  0x25   :  { %796 = vmatpush.bf16.msra.mxu0 %v1537_v37  ;;  %v1648_v60 = vld [vmem:[#allocation5 + $0x120] sm:$0xf]  ;;  %v2184_v61 = vld [vmem:[#allocation5 + $0x124] sm:$0xf0]  ;;  %v1729_v1 = vor.u32 %v2204_v58, %v1728_v57  ;;  %v1585_v2 = vor.u32 %v2168_v59, %v1584_v56  ;;  %v1576_v4 = vld [vmem:[#allocation5 + $0x90] sm:$0xf]  ;;  %v1513_v10 = vor.u32 %v2150_v0, %v1512_v63 }
  0x26   :  { %809 = vmatpush.bf16.msra.mxu1 %v1601_v41  ;;  %v1649_v3 = vor.u32 %v2184_v61, %v1648_v60  ;;  %v1720_v5 = vld [vmem:[#allocation5 + $0x1b0] sm:$0xf]  ;;  %v2202_v6 = vld [vmem:[#allocation5 + $0x1b4] sm:$0xf0]  ;;  %v1504_v11 = vld [vmem:[#allocation5] sm:$0xf] }
  0x27   :  { %822 = vmatpush.bf16.msra.mxu2 %v1665_v42  ;;  %v2166_v7 = vld [vmem:[#allocation5 + $0x94] sm:$0xf0]  ;;  %v1640_v8 = vld [vmem:[#allocation5 + $0x110] sm:$0xf]  ;;  %v2148_v12 = vld [vmem:[#allocation5 + $0x4] sm:$0xf0]  ;;  %v1721_v14 = vor.u32 %v2202_v6, %v1720_v5 }
  0x28   :  { %834 = vmatpush.bf16.msra.mxu3 %v1737_v53  ;;  %v2182_v9 = vld [vmem:[#allocation5 + $0x114] sm:$0xf0]  ;;  %v1568_v13 = vld [vmem:[#allocation5 + $0x80] sm:$0xf]  ;;  %v1577_v15 = vor.u32 %v2166_v7, %v1576_v4  ;;  %v2164_v17 = vld [vmem:[#allocation5 + $0x84] sm:$0xf0]  ;;  %v1505_v26 = vor.u32 %v2148_v12, %v1504_v11 }
  0x29   :  { %797 = vmatpush.bf16.msra.mxu0 %v1529_v50  ;;  %v1641_v16 = vor.u32 %v2182_v9, %v1640_v8  ;;  %v1712_v18 = vld [vmem:[#allocation5 + $0x1a0] sm:$0xf]  ;;  %v2200_v19 = vld [vmem:[#allocation5 + $0x1a4] sm:$0xf0]  ;;  %v1816_v22 = vld [vmem:[#allocation5 + $0x270] sm:$0xf]  ;;  %v1569_v30 = vor.u32 %v2164_v17, %v1568_v13 }
  0x2a   :  { %810 = vmatpush.bf16.msra.mxu1 %v1593_v54  ;;  %v1632_v20 = vld [vmem:[#allocation5 + $0x100] sm:$0xf]  ;;  %v2180_v21 = vld [vmem:[#allocation5 + $0x104] sm:$0xf0]  ;;  %v2226_v23 = vld [vmem:[#allocation5 + $0x274] sm:$0xf0]  ;;  %v1713_v29 = vor.u32 %v2200_v19, %v1712_v18 }
  0x2b   :  { %823 = vmatpush.bf16.msra.mxu2 %v1657_v55  ;;  %v1880_v24 = vld [vmem:[#allocation5 + $0x2f0] sm:$0xf]  ;;  %v2242_v25 = vld [vmem:[#allocation5 + $0x2f4] sm:$0xf0]  ;;  %v1633_v31 = vor.u32 %v2180_v21, %v1632_v20  ;;  %v1817_v34 = vor.u32 %v2226_v23, %v1816_v22  ;;  %v1808_v36 = vld [vmem:[#allocation5 + $0x260] sm:$0xf] }
  0x2c   :  { %835 = vmatpush.bf16.msra.mxu3 %v1729_v1  ;;  %v1944_v27 = vld [vmem:[#allocation5 + $0x370] sm:$0xf]  ;;  %v2258_v28 = vld [vmem:[#allocation5 + $0x374] sm:$0xf0]  ;;  %v1881_v35 = vor.u32 %v2242_v25, %v1880_v24  ;;  %v2224_v37 = vld [vmem:[#allocation5 + $0x264] sm:$0xf0] }
  0x2d   :  { %798 = vmatpush.bf16.msra.mxu0 %v1521_v62  ;;  %v1704_v32 = vld [vmem:[#allocation5 + $0x190] sm:$0xf]  ;;  %v2198_v33 = vld [vmem:[#allocation5 + $0x194] sm:$0xf0]  ;;  %v1945_v38 = vor.u32 %v2258_v28, %v1944_v27  ;;  %v1872_v39 = vld [vmem:[#allocation5 + $0x2e0] sm:$0xf]  ;;  %v1809_v50 = vor.u32 %v2224_v37, %v1808_v36 }
  0x2e   :  { %811 = vmatpush.bf16.msra.mxu1 %v1585_v2  ;;  %v2240_v40 = vld [vmem:[#allocation5 + $0x2e4] sm:$0xf0]  ;;  %v103_v41 = vld [vmem:[#allocation2 + $0x10] sm:$0xff]  ;;  %v1936_v42 = vld [vmem:[#allocation5 + $0x360] sm:$0xf]  ;;  %v1705_v44 = vor.u32 %v2198_v33, %v1704_v32  ;;  %s2499_s28 = smov [#allocation11]  }
  0x2f   :  { %824 = vmatpush.bf16.msra.mxu2 %v1649_v3  ;;  %v2256_v43 = vld [vmem:[#allocation5 + $0x364] sm:$0xf0]  ;;  %v2555_v45 = vpack.c.bf16 %v103_v41, %v103_v41  ;;  %v1800_v46 = vld [vmem:[#allocation5 + $0x250] sm:$0xf]  ;;  %v1696_v47 = vld [vmem:[#allocation5 + $0x180] sm:$0xf]  ;;  %v1873_v51 = vor.u32 %v2240_v40, %v1872_v39 }
  0x30   :  { %836 = vmatpush.bf16.msra.mxu3 %v1721_v14  ;;  %v2196_v48 = vld [vmem:[#allocation5 + $0x184] sm:$0xf0]  ;;  %v2161_v52 = vld [vmem:[#allocation5 + $0x74] sm:$0xf]  ;;  %v1562_v53 = vld [vmem:[#allocation5 + $0x78] sm:$0xf0]  ;;  %v1937_v56 = vor.u32 %v2256_v43, %v1936_v42 }
  0x31   :  { %799 = vmatpush.bf16.msra.mxu0 %v1513_v10  ;;  %v101_v49 = vld [vmem:[#allocation2] sm:$0xff]  ;;  %v102_v55 = vld [vmem:[#allocation2 + $0x8] sm:$0xff]  ;;  %v2222_v57 = vld [vmem:[#allocation5 + $0x254] sm:$0xf0]  ;;  %v1697_v63 = vor.u32 %v2196_v48, %v1696_v47  ;;  %v1565_v1 = vor.u32 %v2161_v52, %v1562_v53  ;;  %s1488_s29 = sshll.u32 %s2499_s28, 4  ;;  %s1490_s8 = sshll.u32 %s2603_s7, 4  ;;  %s1489_s29 = int_to_ptr.vmem [resolvable:$true] %s1488_s29  ;;  %s1491_s8 = int_to_ptr.hbm [resolvable:$true] %s1490_s8 }
  0x32   :  { %812 = vmatpush.bf16.msra.mxu1 %v1577_v15  ;;  %v2557_v54 = vpack.c.bf16 %v101_v49, %v101_v49  ;;  %v1864_v58 = vld [vmem:[#allocation5 + $0x2d0] sm:$0xf]  ;;  %v2238_v59 = vld [vmem:[#allocation5 + $0x2d4] sm:$0xf0]  ;;  %v2559_v60 = vpack.c.bf16 %v102_v55, %v102_v55  ;;  %v1792_v0 = vld [vmem:[#allocation5 + $0x240] sm:$0xf]  ;;  %v1801_v2 = vor.u32 %v2222_v57, %v1800_v46 }
  0x33   :  { %825 = vmatpush.bf16.msra.mxu2 %v1641_v16  ;;  %v1928_v61 = vld [vmem:[#allocation5 + $0x350] sm:$0xf]  ;;  %v2254_v62 = vld [vmem:[#allocation5 + $0x354] sm:$0xf0]  ;;  %v1865_v3 = vor.u32 %v2238_v59, %v1864_v58  ;;  %v2220_v4 = vld [vmem:[#allocation5 + $0x244] sm:$0xf0] }
  0x34   :  { %837 = vmatpush.bf16.msra.mxu3 %v1713_v29  ;;  %v2159_v5 = vld [vmem:[#allocation5 + $0x64] sm:$0xf]  ;;  %v1554_v6 = vld [vmem:[#allocation5 + $0x68] sm:$0xf0]  ;;  %v1929_v7 = vor.u32 %v2254_v62, %v1928_v61  ;;  %v1856_v8 = vld [vmem:[#allocation5 + $0x2c0] sm:$0xf]  ;;  %v1793_v15 = vor.u32 %v2220_v4, %v1792_v0 }
  0x35   :  { %800 = vmatpush.bf16.msra.mxu0 %v1505_v26  ;;  %v2236_v9 = vld [vmem:[#allocation5 + $0x2c4] sm:$0xf0]  ;;  %v104_v10 = vld [vmem:[#allocation2 + $0x18] sm:$0xff]  ;;  %v1557_v14 = vor.u32 %v2159_v5, %v1554_v6  ;;  %v1784_v17 = vld [vmem:[#allocation5 + $0x230] sm:$0xf] }
  0x36   :  { %813 = vmatpush.bf16.msra.mxu1 %v1569_v30  ;;  %v1920_v11 = vld [vmem:[#allocation5 + $0x340] sm:$0xf]  ;;  %v2252_v12 = vld [vmem:[#allocation5 + $0x344] sm:$0xf0]  ;;  %v2564_v13 = vpack.c.bf16 %v104_v10, %v104_v10  ;;  %v1857_v16 = vor.u32 %v2236_v9, %v1856_v8  ;;  %v2157_v18 = vld [vmem:[#allocation5 + $0x54] sm:$0xf] }
  0x37   :  { %826 = vmatpush.bf16.msra.mxu2 %v1633_v31  ;;  %v1546_v19 = vld [vmem:[#allocation5 + $0x58] sm:$0xf0]  ;;  %v1921_v20 = vor.u32 %v2252_v12, %v1920_v11  ;;  %v2218_v21 = vld [vmem:[#allocation5 + $0x234] sm:$0xf0]  ;;  %v1848_v22 = vld [vmem:[#allocation5 + $0x2b0] sm:$0xf] }
  0x38   :  { %838 = vmatpush.bf16.msra.mxu3 %v1705_v44  ;;  %801 = vmatmul.bf16.vlgmr.msra.gmra.mxu0 %v2557_v54  ;;  %v2234_v23 = vld [vmem:[#allocation5 + $0x2b4] sm:$0xf0]  ;;  %v1912_v24 = vld [vmem:[#allocation5 + $0x330] sm:$0xf]  ;;  %v1549_v26 = vor.u32 %v2157_v18, %v1546_v19  ;;  %v1785_v27 = vor.u32 %v2218_v21, %v1784_v17  ;;  %v1776_v29 = vld [vmem:[#allocation5 + $0x220] sm:$0xf] }
  0x39   :  { %845 = vmatpush.bf16.msrb.mxu0 %v1817_v34  ;;  %814 = vmatmul.bf16.vlgmr.msra.gmra.mxu1 %v2559_v60  ;;  %v2250_v25 = vld [vmem:[#allocation5 + $0x334] sm:$0xf0]  ;;  %v1849_v28 = vor.u32 %v2234_v23, %v1848_v22  ;;  %v2155_v30 = vld [vmem:[#allocation5 + $0x44] sm:$0xf]  ;;  %v1538_v31 = vld [vmem:[#allocation5 + $0x48] sm:$0xf0] }
  0x3a   :  { %858 = vmatpush.bf16.msrb.mxu1 %v1881_v35  ;;  %827 = vmatmul.bf16.vlgmr.msra.gmra.mxu2 %v2555_v45  ;;  %v1913_v32 = vor.u32 %v2250_v25, %v1912_v24  ;;  %v2216_v33 = vld [vmem:[#allocation5 + $0x224] sm:$0xf0]  ;;  %v1840_v34 = vld [vmem:[#allocation5 + $0x2a0] sm:$0xf]  ;;  %v1768_v41 = vld [vmem:[#allocation5 + $0x210] sm:$0xf] }
  0x3b   :  { %871 = vmatpush.bf16.msrb.mxu2 %v1945_v38  ;;  %v2232_v35 = vld [vmem:[#allocation5 + $0x2a4] sm:$0xf0]  ;;  %v1904_v36 = vld [vmem:[#allocation5 + $0x320] sm:$0xf]  ;;  %v1541_v38 = vor.u32 %v2155_v30, %v1538_v31  ;;  %v1777_v39 = vor.u32 %v2216_v33, %v1776_v29  ;;  %v2153_v42 = vld [vmem:[#allocation5 + $0x34] sm:$0xf] }
  0x3c   :  { %839 = vmatpush.bf16.msra.mxu3 %v1697_v63  ;;  %v2248_v37 = vld [vmem:[#allocation5 + $0x324] sm:$0xf0]  ;;  %v1841_v40 = vor.u32 %v2232_v35, %v1840_v34  ;;  %v1530_v43 = vld [vmem:[#allocation5 + $0x38] sm:$0xf0]  ;;  %v2214_v46 = vld [vmem:[#allocation5 + $0x214] sm:$0xf0] }
  0x3d   :  { %846 = vmatpush.bf16.msrb.mxu0 %v1809_v50  ;;  %v1905_v44 = vor.u32 %v2248_v37, %v1904_v36  ;;  %v1832_v47 = vld [vmem:[#allocation5 + $0x290] sm:$0xf]  ;;  %v2230_v48 = vld [vmem:[#allocation5 + $0x294] sm:$0xf0]  ;;  %v2212_v52 = vld [vmem:[#allocation5 + $0x204] sm:$0xf0]  ;;  %v1533_v53 = vor.u32 %v2153_v42, %v1530_v43  ;;  %v1769_v55 = vor.u32 %v2214_v46, %v1768_v41 }
  0x3e   :  { %859 = vmatpush.bf16.msrb.mxu1 %v1873_v51  ;;  %v1896_v49 = vld [vmem:[#allocation5 + $0x310] sm:$0xf]  ;;  %v2246_v50 = vld [vmem:[#allocation5 + $0x314] sm:$0xf0]  ;;  %v1760_v51 = vld [vmem:[#allocation5 + $0x200] sm:$0xf] }
  0x3f   :  { %872 = vmatpush.bf16.msrb.mxu2 %v1937_v56  ;;  %840 = vmatmul.bf16.vlgmr.msra.gmra.mxu3 %v2564_v13  ;;  %v1833_v56 = vor.u32 %v2230_v48, %v1832_v47  ;;  %v1824_v57 = vld [vmem:[#allocation5 + $0x280] sm:$0xf]  ;;  %v2151_v58 = vld [vmem:[#allocation5 + $0x24] sm:$0xf]  ;;  %v1522_v59 = vld [vmem:[#allocation5 + $0x28] sm:$0xf0]  ;;  %v1897_v61 = vor.u32 %v2246_v50, %v1896_v49  ;;  %v1761_v8 = vor.u32 %v2212_v52, %v1760_v51 }
  0x40   :  { %884 = vmatpush.bf16.msrb.mxu3 %v1565_v1  ;;  %v2228_v62 = vld [vmem:[#allocation5 + $0x284] sm:$0xf0]  ;;  %v1888_v63 = vld [vmem:[#allocation5 + $0x300] sm:$0xf]  ;;  %v2177_v1 = vld [vmem:[#allocation5 + $0xf4] sm:$0xf]  ;;  %v1525_v5 = vor.u32 %v2151_v58, %v1522_v59 }
  0x41   :  { %847 = vmatpush.bf16.msrb.mxu0 %v1801_v2  ;;  %v2244_v0 = vld [vmem:[#allocation5 + $0x304] sm:$0xf0]  ;;  %v1626_v2 = vld [vmem:[#allocation5 + $0xf8] sm:$0xf0]  ;;  %v2209_v6 = vld [vmem:[#allocation5 + $0x1f4] sm:$0xf]  ;;  %v1825_v9 = vor.u32 %v2228_v62, %v1824_v57 }
  0x42   :  { %860 = vmatpush.bf16.msrb.mxu1 %v1865_v3  ;;  %v2193_v3 = vld [vmem:[#allocation5 + $0x174] sm:$0xf]  ;;  %v1690_v4 = vld [vmem:[#allocation5 + $0x178] sm:$0xf0]  ;;  %v105_v10 = vld [vmem:[#allocation2 + $0x20] sm:$0xff]  ;;  %v1889_v12 = vor.u32 %v2244_v0, %v1888_v63 }
  0x43   :  { %873 = vmatpush.bf16.msrb.mxu2 %v1929_v7  ;;  %v1754_v7 = vld [vmem:[#allocation5 + $0x1f8] sm:$0xf0]  ;;  %v106_v11 = vld [vmem:[#allocation2 + $0x28] sm:$0xff]  ;;  %v1693_v18 = vor.u32 %v2193_v3, %v1690_v4  ;;  %v2175_v19 = vld [vmem:[#allocation5 + $0xe4] sm:$0xf]  ;;  %v2567_v23 = vpack.c.bf16 %v105_v10, %v105_v10 }
  0x44   :  { %885 = vmatpush.bf16.msrb.mxu3 %v1557_v14  ;;  %v1629_v14 = vor.u32 %v2177_v1, %v1626_v2  ;;  %v1514_v17 = vld [vmem:[#allocation5 + $0x18] sm:$0xf0]  ;;  %v2191_v21 = vld [vmem:[#allocation5 + $0x164] sm:$0xf]  ;;  %v1757_v22 = vor.u32 %v2209_v6, %v1754_v7  ;;  %v1682_v24 = vld [vmem:[#allocation5 + $0x168] sm:$0xf0]  ;;  %v2569_v25 = vpack.c.bf16 %v106_v11, %v106_v11 }
  0x45   :  { %848 = vmatpush.bf16.msrb.mxu0 %v1793_v15  ;;  %v107_v15 = vld [vmem:[#allocation2 + $0x30] sm:$0xff]  ;;  %v2173_v30 = vld [vmem:[#allocation5 + $0xd4] sm:$0xf]  ;;  %v2147_v33 = vld [vmem:[#allocation5 + $0x4] sm:$0xf]  ;;  %v1685_v35 = vor.u32 %v2191_v21, %v1682_v24 }
  0x46   :  { %861 = vmatpush.bf16.msrb.mxu1 %v1857_v16  ;;  %v2149_v16 = vld [vmem:[#allocation5 + $0x14] sm:$0xf]  ;;  %v1506_v34 = vld [vmem:[#allocation5 + $0x8] sm:$0xf0]  ;;  %v1738_v42 = vld [vmem:[#allocation5 + $0x1d8] sm:$0xf0] }
  0x47   :  { %874 = vmatpush.bf16.msrb.mxu2 %v1921_v20  ;;  %v1618_v20 = vld [vmem:[#allocation5 + $0xe8] sm:$0xf0]  ;;  %v1517_v29 = vor.u32 %v2149_v16, %v1514_v17  ;;  %v2189_v36 = vld [vmem:[#allocation5 + $0x154] sm:$0xf]  ;;  %v1509_v43 = vor.u32 %v2147_v33, %v1506_v34  ;;  %v2171_v46 = vld [vmem:[#allocation5 + $0xc4] sm:$0xf] }
  0x48   :  { %886 = vmatpush.bf16.msrb.mxu3 %v1549_v26  ;;  %v2207_v26 = vld [vmem:[#allocation5 + $0x1e4] sm:$0xf]  ;;  %v1621_v31 = vor.u32 %v2175_v19, %v1618_v20  ;;  %v2225_v37 = vld [vmem:[#allocation5 + $0x274] sm:$0xf]  ;;  %v1602_v47 = vld [vmem:[#allocation5 + $0xc8] sm:$0xf0] }
  0x49   :  { %849 = vmatpush.bf16.msrb.mxu0 %v1785_v27  ;;  %v1746_v27 = vld [vmem:[#allocation5 + $0x1e8] sm:$0xf0]  ;;  %v2205_v41 = vld [vmem:[#allocation5 + $0x1d4] sm:$0xf]  ;;  %v2187_v50 = vld [vmem:[#allocation5 + $0x144] sm:$0xf]  ;;  %v1605_v58 = vor.u32 %v2171_v46, %v1602_v47 }
  0x4a   :  { %862 = vmatpush.bf16.msrb.mxu1 %v1849_v28  ;;  %v2571_v28 = vpack.c.bf16 %v107_v15, %v107_v15  ;;  %v2223_v51 = vld [vmem:[#allocation5 + $0x264] sm:$0xf]  ;;  %v1810_v52 = vld [vmem:[#allocation5 + $0x268] sm:$0xf0]  ;;  %v2169_v59 = vld [vmem:[#allocation5 + $0xb4] sm:$0xf] }
  0x4b   :  { %875 = vmatpush.bf16.msrb.mxu2 %v1913_v32  ;;  %v1610_v32 = vld [vmem:[#allocation5 + $0xd8] sm:$0xf0]  ;;  %v1730_v57 = vld [vmem:[#allocation5 + $0x1c8] sm:$0xf0]  ;;  %v2185_v62 = vld [vmem:[#allocation5 + $0x134] sm:$0xf]  ;;  %v1813_v63 = vor.u32 %v2223_v51, %v1810_v52 }
  0x4c   :  { %887 = vmatpush.bf16.msrb.mxu3 %v1541_v38  ;;  %v1818_v38 = vld [vmem:[#allocation5 + $0x278] sm:$0xf0]  ;;  %v2221_v1 = vld [vmem:[#allocation5 + $0x254] sm:$0xf]  ;;  %v1794_v15 = vld [vmem:[#allocation5 + $0x248] sm:$0xf0] }
  0x4d   :  { %850 = vmatpush.bf16.msrb.mxu0 %v1777_v39  ;;  %v1749_v39 = vor.u32 %v2207_v26, %v1746_v27  ;;  %v1821_v48 = vor.u32 %v2225_v37, %v1818_v38  ;;  %v1802_v2 = vld [vmem:[#allocation5 + $0x258] sm:$0xf0]  ;;  %v1650_v17 = vld [vmem:[#allocation5 + $0x128] sm:$0xf0]  ;;  %v2181_v26 = vld [vmem:[#allocation5 + $0x114] sm:$0xf] }
  0x4e   :  { %863 = vmatpush.bf16.msrb.mxu1 %v1841_v40  ;;  %v1674_v40 = vld [vmem:[#allocation5 + $0x158] sm:$0xf0]  ;;  %v1805_v10 = vor.u32 %v2221_v1, %v1802_v2  ;;  %v1714_v19 = vld [vmem:[#allocation5 + $0x1a8] sm:$0xf0]  ;;  %v2217_v27 = vld [vmem:[#allocation5 + $0x234] sm:$0xf] }
  0x4f   :  { %876 = vmatpush.bf16.msrb.mxu2 %v1905_v44  ;;  %v1613_v44 = vor.u32 %v2173_v30, %v1610_v32  ;;  %v1677_v49 = vor.u32 %v2189_v36, %v1674_v40  ;;  %v1658_v4 = vld [vmem:[#allocation5 + $0x138] sm:$0xf0]  ;;  %v2197_v32 = vld [vmem:[#allocation5 + $0x194] sm:$0xf]  ;;  %v1570_v36 = vld [vmem:[#allocation5 + $0x88] sm:$0xf0] }
  0x50   :  { %888 = vmatpush.bf16.msrb.mxu3 %v1533_v53  ;;  %v1741_v53 = vor.u32 %v2205_v41, %v1738_v42  ;;  %v1722_v6 = vld [vmem:[#allocation5 + $0x1b8] sm:$0xf0]  ;;  %v1661_v11 = vor.u32 %v2185_v62, %v1658_v4  ;;  %v2179_v37 = vld [vmem:[#allocation5 + $0x104] sm:$0xf]  ;;  %v1634_v40 = vld [vmem:[#allocation5 + $0x108] sm:$0xf0] }
  0x51   :  { %851 = vmatpush.bf16.msrb.mxu0 %v1769_v55  ;;  %v1666_v55 = vld [vmem:[#allocation5 + $0x148] sm:$0xf0]  ;;  %v1578_v21 = vld [vmem:[#allocation5 + $0x98] sm:$0xf0]  ;;  %v2215_v41 = vld [vmem:[#allocation5 + $0x224] sm:$0xf] }
  0x52   :  { %864 = vmatpush.bf16.msrb.mxu1 %v1833_v56  ;;  %v2203_v56 = vld [vmem:[#allocation5 + $0x1c4] sm:$0xf]  ;;  %v1669_v0 = vor.u32 %v2187_v50, %v1666_v55  ;;  %v1706_v33 = vld [vmem:[#allocation5 + $0x198] sm:$0xf0]  ;;  %v1778_v42 = vld [vmem:[#allocation5 + $0x228] sm:$0xf0] }
  0x53   :  { %877 = vmatpush.bf16.msrb.mxu2 %v1897_v61  ;;  %v1594_v61 = vld [vmem:[#allocation5 + $0xb8] sm:$0xf0]  ;;  %v1733_v3 = vor.u32 %v2203_v56, %v1730_v57  ;;  %v2257_v47 = vld [vmem:[#allocation5 + $0x374] sm:$0xf]  ;;  %v1698_v50 = vld [vmem:[#allocation5 + $0x188] sm:$0xf0]  ;;  %v1781_v52 = vor.u32 %v2215_v41, %v1778_v42 }
  0x54   :  { %889 = vmatpush.bf16.msrb.mxu3 %v1525_v5  ;;  %v2201_v5 = vld [vmem:[#allocation5 + $0x1b4] sm:$0xf]  ;;  %v1597_v7 = vor.u32 %v2169_v59, %v1594_v61  ;;  %v1882_v46 = vld [vmem:[#allocation5 + $0x2f8] sm:$0xf0]  ;;  %v2239_v59 = vld [vmem:[#allocation5 + $0x2e4] sm:$0xf] }
  0x55   :  { %852 = vmatpush.bf16.msrb.mxu0 %v1761_v8  ;;  %v2167_v8 = vld [vmem:[#allocation5 + $0xa4] sm:$0xf]  ;;  %v1725_v16 = vor.u32 %v2201_v5, %v1722_v6  ;;  %v2213_v56 = vld [vmem:[#allocation5 + $0x214] sm:$0xf]  ;;  %v1770_v57 = vld [vmem:[#allocation5 + $0x218] sm:$0xf0] }
  0x56   :  { %865 = vmatpush.bf16.msrb.mxu1 %v1825_v9  ;;  %v1586_v9 = vld [vmem:[#allocation5 + $0xa8] sm:$0xf0]  ;;  %v1773_v1 = vor.u32 %v2213_v56, %v1770_v57  ;;  %v2237_v6 = vld [vmem:[#allocation5 + $0x2d4] sm:$0xf]  ;;  %v2271_v56 = vld [vmem:[#allocation8 + $0x64] sm:$0xf] }
  0x57   :  { %878 = vmatpush.bf16.msrb.mxu2 %v1889_v12  ;;  %v2183_v12 = vld [vmem:[#allocation5 + $0x124] sm:$0xf]  ;;  %v1589_v20 = vor.u32 %v2167_v8, %v1586_v9  ;;  %v1874_v61 = vld [vmem:[#allocation5 + $0x2e8] sm:$0xf0]  ;;  %v2253_v8 = vld [vmem:[#allocation5 + $0x354] sm:$0xf] }
  0x58   :  { %853 = vmatmul.bf16.vlgmr.msrb.gmra.mxu0 %v2567_v23  ;;  %890 = vmatpush.bf16.msrb.mxu3 %v1517_v29  ;;  %v1653_v24 = vor.u32 %v2183_v12, %v1650_v17  ;;  %v1786_v29 = vld [vmem:[#allocation5 + $0x238] sm:$0xf0]  ;;  %v1877_v2 = vor.u32 %v2239_v59, %v1874_v61  ;;  %v1762_v4 = vld [vmem:[#allocation5 + $0x208] sm:$0xf0] }
  0x59   :  { %897 = vmatpush.bf16.msra.mxu0 %v1629_v14  ;;  %866 = vmatmul.bf16.vlgmr.msrb.gmra.mxu1 %v2569_v25  ;;  %v2219_v14 = vld [vmem:[#allocation5 + $0x244] sm:$0xf]  ;;  %v1789_v38 = vor.u32 %v2217_v27, %v1786_v29  ;;  %v1930_v9 = vld [vmem:[#allocation5 + $0x358] sm:$0xf0]  ;;  %v1922_v17 = vld [vmem:[#allocation5 + $0x348] sm:$0xf0] }
  0x5a   :  { %910 = vmatpush.bf16.msra.mxu1 %v1693_v18  ;;  %879 = vmatmul.bf16.vlgmr.msrb.gmra.mxu2 %v2571_v28  ;;  %v2199_v18 = vld [vmem:[#allocation5 + $0x1a4] sm:$0xf]  ;;  %v1933_v12 = vor.u32 %v2253_v8, %v1930_v9  ;;  %v1906_v27 = vld [vmem:[#allocation5 + $0x328] sm:$0xf0] }
  0x5b   :  { %923 = vmatpush.bf16.msra.mxu2 %v1757_v22  ;;  %v1797_v22 = vor.u32 %v2219_v14, %v1794_v15  ;;  %v1717_v30 = vor.u32 %v2199_v18, %v1714_v19  ;;  %v2235_v14 = vld [vmem:[#allocation5 + $0x2c4] sm:$0xf]  ;;  %v1858_v15 = vld [vmem:[#allocation5 + $0x2c8] sm:$0xf0]  ;;  %v2233_v19 = vld [vmem:[#allocation5 + $0x2b4] sm:$0xf] }
  0x5c   :  { %891 = vmatpush.bf16.msrb.mxu3 %v1509_v43  ;;  %v1709_v43 = vor.u32 %v2197_v32, %v1706_v33  ;;  %v1861_v18 = vor.u32 %v2235_v14, %v1858_v15  ;;  %v1834_v32 = vld [vmem:[#allocation5 + $0x298] sm:$0xf0]  ;;  %v2245_v33 = vld [vmem:[#allocation5 + $0x314] sm:$0xf]  ;;  %v2268_v8 = vld [vmem:[#allocation8 + $0x44] sm:$0xf0] }
  0x5d   :  { %898 = vmatpush.bf16.msra.mxu0 %v1621_v31  ;;  %v1642_v31 = vld [vmem:[#allocation5 + $0x118] sm:$0xf0]  ;;  %v2267_v9 = vld [vmem:[#allocation8 + $0x44] sm:$0xf]  ;;  %v1978_v15 = vld [vmem:[#allocation8 + $0x30] sm:$0xf] }
  0x5e   :  { %911 = vmatpush.bf16.msra.mxu1 %v1685_v35  ;;  %v2163_v35 = vld [vmem:[#allocation5 + $0x84] sm:$0xf] }
  0x5f   :  { %924 = vmatpush.bf16.msra.mxu2 %v1749_v39  ;;  %892 = vmatmul.bf16.vlgmr.msrb.gmra.mxu3 %v2557_v54  ;;  %v2165_v54 = vld [vmem:[#allocation5 + $0x94] sm:$0xf]  ;;  %v1645_v39 = vor.u32 %v2181_v26, %v1642_v31  ;;  %v1573_v51 = vor.u32 %v2163_v35, %v1570_v36  ;;  %v2247_v26 = vld [vmem:[#allocation5 + $0x324] sm:$0xf] }
  0x60   :  { %936 = vmatpush.bf16.msra.mxu3 %v1821_v48  ;;  %v1581_v34 = vor.u32 %v2165_v54, %v1578_v21  ;;  %v1946_v48 = vld [vmem:[#allocation5 + $0x378] sm:$0xf0]  ;;  %v2229_v31 = vld [vmem:[#allocation5 + $0x294] sm:$0xf]  ;;  %v2227_v36 = vld [vmem:[#allocation5 + $0x284] sm:$0xf] }
  0x61   :  { %899 = vmatpush.bf16.msra.mxu0 %v1613_v44  ;;  %v2241_v44 = vld [vmem:[#allocation5 + $0x2f4] sm:$0xf]  ;;  %v1914_v54 = vld [vmem:[#allocation5 + $0x338] sm:$0xf0] }
  0x62   :  { %912 = vmatpush.bf16.msra.mxu1 %v1677_v49  ;;  %v2195_v49 = vld [vmem:[#allocation5 + $0x184] sm:$0xf]  ;;  %v1885_v55 = vor.u32 %v2241_v44, %v1882_v46  ;;  %v2010_v44 = vld [vmem:[#allocation8 + $0x70] sm:$0xf]  ;;  %v2274_v46 = vld [vmem:[#allocation8 + $0x74] sm:$0xf0] }
  0x63   :  { %925 = vmatpush.bf16.msra.mxu2 %v1741_v53  ;;  %v1637_v53 = vor.u32 %v2179_v37, %v1634_v40  ;;  %v1701_v62 = vor.u32 %v2195_v49, %v1698_v50  ;;  %v1826_v37 = vld [vmem:[#allocation5 + $0x288] sm:$0xf0]  ;;  %v2012_v49 = vld [vmem:[#allocation8 + $0x78] sm:$0xf0] }
  0x64   :  { %937 = vmatpush.bf16.msra.mxu3 %v1813_v63  ;;  %v2255_v63 = vld [vmem:[#allocation5 + $0x364] sm:$0xf]  ;;  %v1829_v40 = vor.u32 %v2227_v36, %v1826_v37  ;;  %v2260_v37 = vld [vmem:[#allocation8 + $0x4] sm:$0xf0] }
  0x65   :  { %900 = vmatpush.bf16.msra.mxu0 %v1605_v58  ;;  %v1949_v58 = vor.u32 %v2257_v47, %v1946_v48  ;;  %v2273_v47 = vld [vmem:[#allocation8 + $0x74] sm:$0xf]  ;;  %v2011_v48 = vor.u32 %v2274_v46, %v2010_v44  ;;  %v1954_v36 = vld [vmem:[#allocation8] sm:$0xf] }
  0x66   :  { %913 = vmatpush.bf16.msra.mxu1 %v1669_v0  ;;  %v1938_v0 = vld [vmem:[#allocation5 + $0x368] sm:$0xf0]  ;;  %v2015_v50 = vor.u32 %v2273_v47, %v2012_v49 }
  0x67   :  { %926 = vmatpush.bf16.msra.mxu2 %v1733_v3  ;;  %v2211_v3 = vld [vmem:[#allocation5 + $0x204] sm:$0xf]  ;;  %v1941_v5 = vor.u32 %v2255_v63, %v1938_v0  ;;  %v2270_v63 = vld [vmem:[#allocation8 + $0x54] sm:$0xf0]  ;;  %v2269_v0 = vld [vmem:[#allocation8 + $0x54] sm:$0xf] }
  0x68   :  { %938 = vmatpush.bf16.msra.mxu3 %v1805_v10  ;;  %v1765_v10 = vor.u32 %v2211_v3, %v1762_v4 }
  0x69   :  { %901 = vmatpush.bf16.msra.mxu0 %v1597_v7  ;;  %v1866_v7 = vld [vmem:[#allocation5 + $0x2d8] sm:$0xf0] }
  0x6a   :  { %914 = vmatpush.bf16.msra.mxu1 %v1661_v11  ;;  %v1869_v11 = vor.u32 %v2237_v6, %v1866_v7  ;;  %v1986_v7 = vld [vmem:[#allocation8 + $0x40] sm:$0xf] }
  0x6b   :  { %927 = vmatpush.bf16.msra.mxu2 %v1725_v16  ;;  %v2251_v16 = vld [vmem:[#allocation5 + $0x344] sm:$0xf] }
  0x6c   :  { %939 = vmatpush.bf16.msra.mxu3 %v1797_v22  ;;  %v2231_v22 = vld [vmem:[#allocation5 + $0x2a4] sm:$0xf] }
  0x6d   :  { %902 = vmatpush.bf16.msra.mxu0 %v1589_v20  ;;  %v1850_v20 = vld [vmem:[#allocation5 + $0x2b8] sm:$0xf0] }
  0x6e   :  { %915 = vmatpush.bf16.msra.mxu1 %v1653_v24  ;;  %v1853_v21 = vor.u32 %v2233_v19, %v1850_v20  ;;  %v1842_v24 = vld [vmem:[#allocation5 + $0x2a8] sm:$0xf0] }
  0x6f   :  { %928 = vmatpush.bf16.msra.mxu2 %v1717_v30  ;;  %v1845_v29 = vor.u32 %v2231_v22, %v1842_v24  ;;  %v1909_v30 = vor.u32 %v2247_v26, %v1906_v27  ;;  %v1972_v24 = vld [vmem:[#allocation8 + $0x28] sm:$0xf0] }
  0x70   :  { %940 = vmatpush.bf16.msra.mxu3 %v1789_v38  ;;  %v2243_v38 = vld [vmem:[#allocation5 + $0x304] sm:$0xf] }
  0x71   :  { %903 = vmatpush.bf16.msra.mxu0 %v1581_v34  ;;  %v1898_v34 = vld [vmem:[#allocation5 + $0x318] sm:$0xf0] }
  0x72   :  { %916 = vmatpush.bf16.msra.mxu1 %v1645_v39  ;;  %v1901_v35 = vor.u32 %v2245_v33, %v1898_v34  ;;  %v1890_v39 = vld [vmem:[#allocation5 + $0x308] sm:$0xf0]  ;;  %v1964_v33 = vld [vmem:[#allocation8 + $0x18] sm:$0xf0] }
  0x73   :  { %929 = vmatpush.bf16.msra.mxu2 %v1709_v43  ;;  %v1893_v41 = vor.u32 %v2243_v38, %v1890_v39  ;;  %v2259_v38 = vld [vmem:[#allocation8 + $0x4] sm:$0xf] }
  0x74   :  { %941 = vmatpush.bf16.msra.mxu3 %v1781_v52 }
  0x75   :  { %904 = vmatpush.bf16.msra.mxu0 %v1573_v51  ;;  %v2583_v51 = vld [vmem:[#allocation7] sm:$0x3] }
  0x76   :  { %917 = vmatpush.bf16.msra.mxu1 %v1637_v53  ;;  %v2002_v53 = vld [vmem:[#allocation8 + $0x60] sm:$0xf]  ;;  %v229_v61 = vperm.slane %v2583_v51, 0 }
  0x77   :  { %930 = vmatpush.bf16.msra.mxu2 %v1701_v62  ;;  %v1994_v62 = vld [vmem:[#allocation8 + $0x50] sm:$0xf] }
  0x78   :  { %905 = vmatmul.bf16.vlgmr.msra.gmra.mxu0 %v2559_v60  ;;  %942 = vmatpush.bf16.msra.mxu3 %v1773_v1  ;;  %v1925_v60 = vor.u32 %v2251_v16, %v1922_v17  ;;  %v1995_v1 = vor.u32 %v2270_v63, %v1994_v62  ;;  %v2266_v16 = vld [vmem:[#allocation8 + $0x34] sm:$0xf0]  ;;  %v2265_v17 = vld [vmem:[#allocation8 + $0x34] sm:$0xf]  ;;  %v2076_v63 = vld [vmem:[#allocation8 + $0xf8] sm:$0xf0] }
  0x79   :  { %949 = vmatpush.bf16.msrb.mxu0 %v1885_v55  ;;  %918 = vmatmul.bf16.vlgmr.msra.gmra.mxu1 %v2555_v45  ;;  %v2249_v45 = vld [vmem:[#allocation5 + $0x334] sm:$0xf]  ;;  %v2272_v55 = vld [vmem:[#allocation8 + $0x64] sm:$0xf0] }
  0x7a   :  { %962 = vmatpush.bf16.msrb.mxu1 %v1949_v58  ;;  %931 = vmatmul.bf16.vlgmr.msra.gmra.mxu2 %v2564_v13  ;;  %v1917_v13 = vor.u32 %v2249_v45, %v1914_v54  ;;  %v2003_v57 = vor.u32 %v2272_v55, %v2002_v53  ;;  %v1970_v54 = vld [vmem:[#allocation8 + $0x20] sm:$0xf] }
  0x7b   :  { %1213 = vmatpush.bf16.msrb.mxu2 %v2011_v48 }
  0x7c   :  { %943 = vmatpush.bf16.msra.mxu3 %v1765_v10  ;;  %v1987_v10 = vor.u32 %v2268_v8, %v1986_v7  ;;  %v2288_v7 = vld [vmem:[#allocation8 + $0xe4] sm:$0xf0]  ;;  %v2287_v8 = vld [vmem:[#allocation8 + $0xe4] sm:$0xf] }
  0x7d   :  { %950 = vmatpush.bf16.msrb.mxu0 %v1877_v2  ;;  %v1996_v2 = vld [vmem:[#allocation8 + $0x58] sm:$0xf0] }
  0x7e   :  { %963 = vmatpush.bf16.msrb.mxu1 %v1941_v5  ;;  %v1999_v4 = vor.u32 %v2269_v0, %v1996_v2 }
  0x7f   :  { %944 = vmatmul.bf16.vlgmr.msra.gmra.mxu3 %v2567_v23  ;;  %v1837_v23 = vor.u32 %v2229_v31, %v1834_v32  ;;  %1214 = vmatpush.bf16.msrb.mxu2 %v2003_v57  ;;  %v2261_v32 = vld [vmem:[#allocation8 + $0x14] sm:$0xf] }
  0x81   :  { %951 = vmatpush.bf16.msrb.mxu0 %v1869_v11  ;;  %v1988_v11 = vld [vmem:[#allocation8 + $0x48] sm:$0xf0] }
  0x82   :  { %964 = vmatpush.bf16.msrb.mxu1 %v1933_v12  ;;  %v1991_v12 = vor.u32 %v2267_v9, %v1988_v11 }
  0x83   :  { %1215 = vmatpush.bf16.msrb.mxu2 %v1995_v1 }
  0x85   :  { %952 = vmatpush.bf16.msrb.mxu0 %v1861_v18  ;;  %v1979_v18 = vor.u32 %v2266_v16, %v1978_v15  ;;  %v2058_v16 = vld [vmem:[#allocation8 + $0xd0] sm:$0xf] }
  0x86   :  { %965 = vmatpush.bf16.msrb.mxu1 %v1925_v60  ;;  %v1980_v60 = vld [vmem:[#allocation8 + $0x38] sm:$0xf0] }
  0x87   :  { %1216 = vmatpush.bf16.msrb.mxu2 %v1987_v10  ;;  %v1983_v20 = vor.u32 %v2265_v17, %v1980_v60  ;;  %v2068_v10 = vld [vmem:[#allocation8 + $0xe8] sm:$0xf0]  ;;  %v2286_v17 = vld [vmem:[#allocation8 + $0xd4] sm:$0xf0]  ;;  %v230_v60 = vperm.slane %v2583_v51, 1 }
  0x89   :  { %953 = vmatpush.bf16.msrb.mxu0 %v1853_v21  ;;  %v2264_v21 = vld [vmem:[#allocation8 + $0x24] sm:$0xf0] }
  0x8a   :  { %966 = vmatpush.bf16.msrb.mxu1 %v1917_v13  ;;  %v2263_v13 = vld [vmem:[#allocation8 + $0x24] sm:$0xf]  ;;  %v1971_v22 = vor.u32 %v2264_v21, %v1970_v54  ;;  %v2059_v54 = vor.u32 %v2286_v17, %v2058_v16  ;;  %v2060_v21 = vld [vmem:[#allocation8 + $0xd8] sm:$0xf0] }
  0x8b   :  { %1217 = vmatpush.bf16.msrb.mxu2 %v1979_v18  ;;  %v1975_v26 = vor.u32 %v2263_v13, %v1972_v24  ;;  %v2285_v18 = vld [vmem:[#allocation8 + $0xd4] sm:$0xf] }
  0x8c   :  { %v2063_v24 = vor.u32 %v2285_v18, %v2060_v21 }
  0x8d   :  { %954 = vmatpush.bf16.msrb.mxu0 %v1845_v29  ;;  %v1962_v29 = vld [vmem:[#allocation8 + $0x10] sm:$0xf] }
  0x8e   :  { %967 = vmatpush.bf16.msrb.mxu1 %v1909_v30  ;;  %v2262_v30 = vld [vmem:[#allocation8 + $0x14] sm:$0xf0] }
  0x8f   :  { %1218 = vmatpush.bf16.msrb.mxu2 %v1971_v22  ;;  %v1963_v31 = vor.u32 %v2262_v30, %v1962_v29  ;;  %v2283_v29 = vld [vmem:[#allocation8 + $0xc4] sm:$0xf] }
  0x91   :  { %955 = vmatpush.bf16.msrb.mxu0 %v1837_v23 }
  0x92   :  { %968 = vmatpush.bf16.msrb.mxu1 %v1901_v35  ;;  %v1967_v35 = vor.u32 %v2261_v32, %v1964_v33  ;;  %v2052_v32 = vld [vmem:[#allocation8 + $0xc8] sm:$0xf0] }
  0x93   :  { %1219 = vmatpush.bf16.msrb.mxu2 %v1963_v31  ;;  %v2055_v33 = vor.u32 %v2283_v29, %v2052_v32  ;;  %v2297_v29 = vld [vmem:[#allocation10 + $0x30] sm:$0xff]  ;;  %v2302_v32 = vld [vmem:[#allocation10 + $0x58] sm:$0xff] }
  0x95   :  { %956 = vmatpush.bf16.msrb.mxu0 %v1829_v40  ;;  %v1955_v40 = vor.u32 %v2260_v37, %v1954_v36 }
  0x96   :  { %969 = vmatpush.bf16.msrb.mxu1 %v1893_v41  ;;  %v1956_v41 = vld [vmem:[#allocation8 + $0x8] sm:$0xf0] }
  0x97   :  { %1220 = vmatpush.bf16.msrb.mxu2 %v1955_v40 }
  0x98   :  { %957 = vmatmul.bf16.vlgmr.msrb.gmra.mxu0 %v2569_v25  ;;  %v2004_v25 = vld [vmem:[#allocation8 + $0x68] sm:$0xf0] }
  0x99   :  { %970 = vmatmul.bf16.vlgmr.msrb.gmra.mxu1 %v2571_v28  ;;  %1239 = vmatpush.bf16.msra.mxu0 %v2015_v50  ;;  %v2007_v59 = vor.u32 %v2271_v56, %v2004_v25 }
  0x9d   :  { %1240 = vmatpush.bf16.msra.mxu0 %v2007_v59  ;;  %v2289_v59 = vld [vmem:[#allocation8 + $0xf4] sm:$0xf] }
  0x9e   :  { %v2079_v2 = vor.u32 %v2289_v59, %v2076_v63  ;;  %v2275_v59 = vld [vmem:[#allocation8 + $0x84] sm:$0xf] }
  0xa0   :  { %1252 = vmatpush.bf16.msra.mxu1 %v2079_v2 }
  0xa1   :  { %1241 = vmatpush.bf16.msra.mxu0 %v1999_v4 }
  0xa5   :  { %1242 = vmatpush.bf16.msra.mxu0 %v1991_v12  ;;  %v2071_v12 = vor.u32 %v2287_v8, %v2068_v10 }
  0xa7   :  { %1253 = vmatpush.bf16.msra.mxu1 %v2071_v12 }
  0xa9   :  { %1243 = vmatpush.bf16.msra.mxu0 %v1983_v20 }
  0xab   :  { %1254 = vmatpush.bf16.msra.mxu1 %v2063_v24  ;;  %v2305_v24 = vld [vmem:[#allocation10 + $0x70] sm:$0xff] }
  0xad   :  { %1244 = vmatpush.bf16.msra.mxu0 %v1975_v26  ;;  %v2050_v26 = vld [vmem:[#allocation8 + $0xc0] sm:$0xf] }
  0xaf   :  { %1255 = vmatpush.bf16.msra.mxu1 %v2055_v33  ;;  %v2295_v33 = vld [vmem:[#allocation10 + $0x20] sm:$0xff] }
  0xb1   :  { %1245 = vmatpush.bf16.msra.mxu0 %v1967_v35  ;;  %v2281_v35 = vld [vmem:[#allocation8 + $0xb4] sm:$0xf] }
  0xb5   :  { %v802_v42 = vpop.f32.mrf.mxu0 }
  0xb6   :  { %v815_v43 = vpop.f32.mrf.mxu1  ;;  %v803_v5 = vadd.f32 %v802_v42, %v229_v61  ;;  %v1959_v42 = vor.u32 %v2259_v38, %v1956_v41  ;;  %v2034_v41 = vld [vmem:[#allocation8 + $0xa0] sm:$0xf] }
  0xb8   :  { %v816_v14 = vadd.f32 %v815_v43, %v803_v5  ;;  %1246 = vmatpush.bf16.msra.mxu0 %v1959_v42  ;;  %v2280_v42 = vld [vmem:[#allocation8 + $0xa4] sm:$0xf0] }
  0xbd   :  { %v828_v52 = vpop.f32.mrf.mxu2  ;;  %v804_v58 = vpop.f32.mrf.mxu0 }
  0xbe   :  { %v817_v28 = vpop.f32.mrf.mxu1  ;;  %v829_v45 = vadd.f32 %v828_v52, %v816_v14  ;;  %v2074_v58 = vld [vmem:[#allocation8 + $0xf0] sm:$0xf] }
  0xbf   :  { %v2290_v28 = vld [vmem:[#allocation8 + $0xf4] sm:$0xf0] }
  0xc0   :  { %v2075_v62 = vor.u32 %v2290_v28, %v2074_v58 }
  0xc2   :  { %v841_v3 = vpop.f32.mrf.mxu3  ;;  %1226 = vmatpush.bf16.msrb.mxu3 %v2075_v62 }
  0xc3   :  { %v842_v27 = vadd.f32 %v841_v3, %v829_v45 }
  0xc5   :  { %v830_v6 = vpop.f32.mrf.mxu2 }
  0xc6   :  { %v2066_v6 = vld [vmem:[#allocation8 + $0xe0] sm:$0xf] }
  0xc7   :  { %v2067_v9 = vor.u32 %v2288_v7, %v2066_v6 }
  0xc9   :  { %1227 = vmatpush.bf16.msrb.mxu3 %v2067_v9 }
  0xca   :  { %v843_v19 = vpop.f32.mrf.mxu3 }
  0xcd   :  { %1228 = vmatpush.bf16.msrb.mxu3 %v2059_v54 }
  0xd5   :  { %v854_v34 = vpop.f32.mrf.mxu0 }
  0xd6   :  { %v867_v23 = vpop.f32.mrf.mxu1  ;;  %v855_v39 = vadd.f32 %v854_v34, %v842_v27  ;;  %v2284_v27 = vld [vmem:[#allocation8 + $0xc4] sm:$0xf0]  ;;  %v2042_v34 = vld [vmem:[#allocation8 + $0xb0] sm:$0xf] }
  0xd7   :  { %v2051_v31 = vor.u32 %v2284_v27, %v2050_v26  ;;  %v2298_v26 = vld [vmem:[#allocation10 + $0x38] sm:$0xff]  ;;  %v2304_v27 = vld [vmem:[#allocation10 + $0x68] sm:$0xff] }
  0xd8   :  { %v868_v43 = vadd.f32 %v867_v23, %v855_v39  ;;  %v2282_v23 = vld [vmem:[#allocation8 + $0xb4] sm:$0xf0]  ;;  %v2044_v39 = vld [vmem:[#allocation8 + $0xb8] sm:$0xf0]  ;;  %1437 = vmatpush.bf16.msra.mxu2 %v2298_v26 }
  0xd9   :  { %1229 = vmatpush.bf16.msrb.mxu3 %v2051_v31  ;;  %v2043_v38 = vor.u32 %v2282_v23, %v2042_v34  ;;  %v2047_v40 = vor.u32 %v2281_v35, %v2044_v39  ;;  %v2296_v31 = vld [vmem:[#allocation10 + $0x28] sm:$0xff]  ;;  %v2294_v34 = vld [vmem:[#allocation10 + $0x18] sm:$0xff]  ;;  %v1047_v23 = vld [vmem:[%s2600_s4] sm:$0x3] }
  0xda   :  { %v2300_v35 = vld [vmem:[#allocation10 + $0x48] sm:$0xff] }
  0xdb   :  { %1256 = vmatpush.bf16.msra.mxu1 %v2047_v40  ;;  %v2292_v39 = vld [vmem:[#allocation10 + $0x8] sm:$0xff] }
  0xdc   :  { %1438 = vmatpush.bf16.msra.mxu2 %v2297_v29 }
  0xdd   :  { %v880_v44 = vpop.f32.mrf.mxu2  ;;  %v856_v47 = vpop.f32.mrf.mxu0  ;;  %1230 = vmatpush.bf16.msrb.mxu3 %v2043_v38  ;;  %v2299_v38 = vld [vmem:[#allocation10 + $0x40] sm:$0xff] }
  0xde   :  { %v881_v46 = vadd.f32 %v880_v44, %v868_v43  ;;  %v869_v48 = vpop.f32.mrf.mxu1  ;;  %v2279_v43 = vld [vmem:[#allocation8 + $0xa4] sm:$0xf]  ;;  %v2036_v47 = vld [vmem:[#allocation8 + $0xa8] sm:$0xf0] }
  0xdf   :  { %v2039_v48 = vor.u32 %v2279_v43, %v2036_v47 }
  0xe0   :  { %v1950_v49 = vmul.f32 -1.442695, %v881_v46  ;;  %v2035_v46 = vor.u32 %v2280_v42, %v2034_v41  ;;  %1439 = vmatpush.bf16.msra.mxu2 %v2296_v31  ;;  %v1049_v42 = vperm.slane %v1047_v23, 0 }
  0xe1   :  { %1257 = vmatpush.bf16.msra.mxu1 %v2039_v48 }
  0xe2   :  { %2318 = vpow2.f32 %v1950_v49  ;;  %v893_v50 = vpop.f32.mrf.mxu3  ;;  %1231 = vmatpush.bf16.msrb.mxu3 %v2035_v46 }
  0xe3   :  { %v894_v30 = vadd.f32 %v893_v50, %v230_v60  ;;  %v2026_v50 = vld [vmem:[#allocation8 + $0x90] sm:$0xf] }
  0xe4   :  { %1440 = vmatpush.bf16.msra.mxu2 %v2295_v33 }
  0xe5   :  { %v882_v52 = vpop.f32.mrf.mxu2 }
  0xe6   :  { %v2278_v52 = vld [vmem:[#allocation8 + $0x94] sm:$0xf0] }
  0xe8   :  { %v2319_v53 = vpop.eup %2318  ;;  %1441 = vmatpush.bf16.msra.mxu2 %v2294_v34 }
  0xe9   :  { %v981_v55 = vadd.f32 1.0, %v2319_v53  ;;  %v2277_v53 = vld [vmem:[#allocation8 + $0x94] sm:$0xf] }
  0xea   :  { %v895_v56 = vpop.f32.mrf.mxu3 }
  0xeb   :  { %2320 = vrcp.f32 %v981_v55  ;;  %v992_v3 = vand.u32 2147483647, %v981_v55  ;;  %v994_v4 = vand.u32 2147483648, %v981_v55  ;;  %vm988_vm1 = vweird.f32 %v981_v55  ;;  %v2028_v56 = vld [vmem:[#allocation8 + $0x98] sm:$0xf0] }
  0xec   :  { %v2031_v28 = vor.u32 %v2277_v53, %v2028_v56 }
  0xed   :  { %vm993_vm3 = vcmp.eq.f32.partialorder %v992_v3, 8.507059e+37  ;;  %v995_v14 = vor.u32 1.1754944e-38, %v994_v4 }
  0xee   :  { %1258 = vmatpush.bf16.msra.mxu1 %v2031_v28 }
  0xf1   :  { %v2321_v57 = vpop.eup %2320 }
  0xf2   :  { %v984_v25 = vmul.f32 %v2321_v57, %v981_v55  ;;  %vm989_vm0 = vweird.f32 %v2321_v57  ;;  %v2027_v55 = vor.u32 %v2278_v52, %v2026_v50 }
  0xf3   :  { %vm990_vm2 = vmor %vm988_vm1, %vm989_vm0 }
  0xf4   :  { %v985_v0 = vsub.f32 1.0, %v984_v25  ;;  %v2276_v25 = vld [vmem:[#allocation8 + $0x84] sm:$0xf0]  ;;  %1232 = vmatpush.bf16.msrb.mxu3 %v2027_v55 }
  0xf5   :  { %v906_v61 = vpop.f32.mrf.mxu0 }
  0xf6   :  { %v919_v1 = vpop.f32.mrf.mxu1  ;;  %v986_v5 = vmul.f32 %v2321_v57, %v985_v0  ;;  %v907_v36 = vadd.f32 %v906_v61, %v894_v30  ;;  %v2020_v61 = vld [vmem:[#allocation8 + $0x88] sm:$0xf0]  ;;  %v2303_v30 = vld [vmem:[#allocation10 + $0x60] sm:$0xff] }
  0xf7   :  { %v2023_v0 = vor.u32 %v2275_v59, %v2020_v61 }
  0xf8   :  { %v987_v11 = vadd.f32 %v2321_v57, %v986_v5  ;;  %v920_v44 = vadd.f32 %v919_v1, %v907_v36  ;;  %v1050_v36 = vperm.slane %v1047_v23, 1 }
  0xf9   :  { %1259 = vmatpush.bf16.msra.mxu1 %v2023_v0 }
  0xfa   :  { %v991_v15 = vsel %vm990_vm2, %v2321_v57, %v987_v11  ;;  %v2018_v57 = vld [vmem:[#allocation8 + $0x80] sm:$0xf] }
  0xfb   :  { %v996_v19 = vsel %vm993_vm3, %v995_v14, %v991_v15  ;;  %v2019_v62 = vor.u32 %v2276_v25, %v2018_v57 }
  0xfc   :  { %v1013_v13 = vpack.c.bf16 %v996_v19, %v996_v19 }
  0xfd   :  { %v908_v20 = vpop.f32.mrf.mxu0  ;;  %v932_v45 = vpop.f32.mrf.mxu2  ;;  %1233 = vmatpush.bf16.msrb.mxu3 %v2019_v62 }
  0xfe   :  { %v921_v22 = vpop.f32.mrf.mxu1  ;;  %1221 = vmatmul.bf16.vlgmr.msrb.gmra.mxu2 %v1013_v13  ;;  %1247 = vmatmul.bf16.vlgmr.msra.gmra.mxu0 %v1013_v13  ;;  %v933_v58 = vadd.f32 %v932_v45, %v920_v44  ;;  %v2291_v44 = vld [vmem:[#allocation10] sm:$0xff] }
  0xff   :  { %v2306_v22 = vld [vmem:[#allocation10 + $0x78] sm:$0xff] }
 0x101   :  { %1450 = vmatpush.bf16.msra.mxu3 %v2306_v22 }
 0x102   :  { %v945_v51 = vpop.f32.mrf.mxu3 }
 0x103   :  { %v946_v63 = vadd.f32 %v945_v51, %v933_v58  ;;  %v2301_v51 = vld [vmem:[#allocation10 + $0x50] sm:$0xff] }
 0x105   :  { %v934_v37 = vpop.f32.mrf.mxu2  ;;  %1451 = vmatpush.bf16.msra.mxu3 %v2305_v24 }
 0x106   :  { %v2293_v37 = vld [vmem:[#allocation10 + $0x10] sm:$0xff] }
 0x107   :  { %1442 = vmatpush.bf16.msra.mxu2 %v2293_v37 }
 0x109   :  { %1452 = vmatpush.bf16.msra.mxu3 %v2304_v27 }
 0x10a   :  { %v947_v49 = vpop.f32.mrf.mxu3 }
 0x10b   :  { %1443 = vmatpush.bf16.msra.mxu2 %v2292_v39 }
 0x10d   :  { %1453 = vmatpush.bf16.msra.mxu3 %v2303_v30 }
 0x10f   :  { %1444 = vmatpush.bf16.msra.mxu2 %v2291_v44 }
 0x111   :  { %1454 = vmatpush.bf16.msra.mxu3 %v2302_v32 }
 0x115   :  { %v958_v1 = vpop.f32.mrf.mxu0  ;;  %1455 = vmatpush.bf16.msra.mxu3 %v2301_v51 }
 0x116   :  { %v959_v2 = vadd.f32 %v958_v1, %v946_v63  ;;  %v971_v3 = vpop.f32.mrf.mxu1 }
 0x118   :  { %v972_v4 = vadd.f32 %v971_v3, %v959_v2 }
 0x119   :  { %1456 = vmatpush.bf16.msra.mxu3 %v2300_v35 }
 0x11a   :  { %v1951_v5 = vmul.f32 -1.442695, %v972_v4 }
 0x11c   :  { %2322 = vpow2.f32 %v1951_v5 }
 0x11d   :  { %v960_v6 = vpop.f32.mrf.mxu0  ;;  %1457 = vmatpush.bf16.msra.mxu3 %v2299_v38 }
 0x11e   :  { %v973_v7 = vpop.f32.mrf.mxu1 }
 0x122   :  { %v2323_v8 = vpop.eup %2322 }
 0x123   :  { %v982_v9 = vadd.f32 1.0, %v2323_v8 }
 0x125   :  { %2324 = vrcp.f32 %v982_v9  ;;  %v1009_v14 = vand.u32 2147483648, %v982_v9  ;;  %v1007_v16 = vand.u32 2147483647, %v982_v9  ;;  %vm1003_vm5 = vweird.f32 %v982_v9 }
 0x127   :  { %v1010_v18 = vor.u32 1.1754944e-38, %v1009_v14  ;;  %vm1008_vm7 = vcmp.eq.f32.partialorder %v1007_v16, 8.507059e+37 }
 0x12b   :  { %v2325_v10 = vpop.eup %2324 }
 0x12c   :  { %v999_v11 = vmul.f32 %v2325_v10, %v982_v9  ;;  %vm1004_vm4 = vweird.f32 %v2325_v10 }
 0x12d   :  { %vm1005_vm6 = vmor %vm1003_vm5, %vm1004_vm4 }
 0x12e   :  { %v1000_v12 = vsub.f32 1.0, %v999_v11 }
 0x130   :  { %v1001_v15 = vmul.f32 %v2325_v10, %v1000_v12 }
 0x132   :  { %v1002_v17 = vadd.f32 %v2325_v10, %v1001_v15 }
 0x134   :  { %v1006_v60 = vsel %vm1005_vm6, %v2325_v10, %v1002_v17 }
 0x135   :  { %v1011_v19 = vsel %vm1008_vm7, %v1010_v18, %v1006_v60  ;;  %v2317_v18 = vld [vmem:[%s2602_s6] ss:$0 sm:$0xff] }
 0x136   :  { %v1014_v20 = vpack.c.bf16 %v1011_v19, %v1011_v19 }
 0x138   :  { %1234 = vmatmul.bf16.vlgmr.msrb.gmra.mxu3 %v1014_v20  ;;  %1260 = vmatmul.bf16.vlgmr.msra.gmra.mxu1 %v1014_v20 }
 0x17b   :  { %v1248_v45 = vpop.f32.mrf.mxu0 }
 0x17c   :  { %v1249_v40 = vadd.f32 %v1248_v45, %v1050_v36 }
 0x181   :  { %v1222_v54 = vpop.f32.mrf.mxu2 }
 0x182   :  { %v1223_v47 = vadd.f32 %v1222_v54, %v1049_v42 }
 0x183   :  { %v1250_v21 = vpop.f32.mrf.mxu0 }
 0x189   :  { %v1224_v13 = vpop.f32.mrf.mxu2 }
 0x1b5   :  { %v1261_v41 = vpop.f32.mrf.mxu1 }
 0x1b6   :  { %v1262_v43 = vadd.f32 %v1261_v41, %v1249_v40 }
 0x1b8   :  { %v2081_v46 = vmul.f32 -1.442695, %v1262_v43 }
 0x1ba   :  { %2326 = vpow2.f32 %v2081_v46 }
 0x1bb   :  { %v1235_v48 = vpop.f32.mrf.mxu3 }
 0x1bc   :  { %v1236_v49 = vadd.f32 %v1235_v48, %v1223_v47 }
 0x1bd   :  { %v1263_v50 = vpop.f32.mrf.mxu1 }
 0x1be   :  { %v2080_v52 = vmul.f32 -1.442695, %v1236_v49 }
 0x1c0   :  { %v2327_v53 = vpop.eup %2326  ;;  %2328 = vpow2.f32 %v2080_v52 }
 0x1c1   :  { %v1272_v55 = vadd.f32 1.0, %v2327_v53 }
 0x1c3   :  { %2330 = vrcp.f32 %v1272_v55  ;;  %v1237_v56 = vpop.f32.mrf.mxu3  ;;  %v1299_v61 = vand.u32 2147483648, %v1272_v55  ;;  %v1297_v63 = vand.u32 2147483647, %v1272_v55  ;;  %vm1293_vm9 = vweird.f32 %v1272_v55 }
 0x1c5   :  { %v1300_v3 = vor.u32 1.1754944e-38, %v1299_v61  ;;  %vm1298_vm11 = vcmp.eq.f32.partialorder %v1297_v63, 8.507059e+37 }
 0x1c6   :  { %v2329_v57 = vpop.eup %2328 }
 0x1c7   :  { %v1271_v25 = vadd.f32 1.0, %v2329_v57 }
 0x1c9   :  { %v2331_v58 = vpop.eup %2330  ;;  %2332 = vrcp.f32 %v1271_v25  ;;  %v1284_v7 = vand.u32 2147483648, %v1271_v25  ;;  %v1282_v10 = vand.u32 2147483647, %v1271_v25  ;;  %vm1278_vm13 = vweird.f32 %v1271_v25 }
 0x1ca   :  { %v1289_v28 = vmul.f32 %v2331_v58, %v1272_v55  ;;  %vm1294_vm8 = vweird.f32 %v2331_v58 }
 0x1cb   :  { %vm1295_vm10 = vmor %vm1293_vm9, %vm1294_vm8  ;;  %v1285_v12 = vor.u32 1.1754944e-38, %v1284_v7  ;;  %vm1283_vm15 = vcmp.eq.f32.partialorder %v1282_v10, 8.507059e+37 }
 0x1cc   :  { %v1290_v59 = vsub.f32 1.0, %v1289_v28 }
 0x1ce   :  { %v1291_v62 = vmul.f32 %v2331_v58, %v1290_v59 }
 0x1cf   :  { %v2333_v0 = vpop.eup %2332 }
 0x1d0   :  { %v1274_v1 = vmul.f32 %v2333_v0, %v1271_v25  ;;  %v1292_v2 = vadd.f32 %v2331_v58, %v1291_v62  ;;  %vm1279_vm12 = vweird.f32 %v2333_v0 }
 0x1d1   :  { %vm1280_vm14 = vmor %vm1278_vm13, %vm1279_vm12 }
 0x1d2   :  { %v1275_v4 = vsub.f32 1.0, %v1274_v1  ;;  %v1296_v5 = vsel %vm1295_vm10, %v2331_v58, %v1292_v2 }
 0x1d3   :  { %v1301_v6 = vsel %vm1298_vm11, %v1300_v3, %v1296_v5 }
 0x1d4   :  { %v1304_v8 = vpack.c.bf16 %v1301_v6, %v1301_v6  ;;  %v1276_v9 = vmul.f32 %v2333_v0, %v1275_v4 }
 0x1d6   :  { %1458 = vmatmul.bf16.vlgmr.msra.gmra.mxu3 %v1304_v8  ;;  %v1277_v11 = vadd.f32 %v2333_v0, %v1276_v9 }
 0x1d8   :  { %v1281_v14 = vsel %vm1280_vm14, %v2333_v0, %v1277_v11 }
 0x1d9   :  { %v1286_v15 = vsel %vm1283_vm15, %v1285_v12, %v1281_v14 }
 0x1da   :  { %v1303_v16 = vpack.c.bf16 %v1286_v15, %v1286_v15 }
 0x1dc   :  { %1445 = vmatmul.bf16.vlgmr.msra.gmra.mxu2 %v1303_v16 }
 0x259   :  { %v1459_v17 = vpop.f32.mrf.mxu3 }
 0x25f   :  { %v1446_v60 = vpop.f32.mrf.mxu2 }
 0x260   :  { %v1447_v19 = vadd.f32 %v2317_v18, %v1446_v60 }
 0x261   :  { %v1461_v20 = vpop.f32.mrf.mxu3 }
 0x262   :  { %v1460_v45 = vadd.f32 %v1459_v17, %v1447_v19 }
 0x264   :  { %v2146_v54 = vmul.f32 -1.442695, %v1460_v45 }
 0x266   :  { %2334 = vpow2.f32 %v2146_v54 }
 0x267   :  { %v1448_v21 = vpop.f32.mrf.mxu2 }
 0x26c   :  { %v2335_v13 = vpop.eup %2334 }
 0x26d   :  { %v1466_v22 = vadd.f32 1.0, %v2335_v13 }
 0x26f   :  { %2336 = vrcp.f32 %v1466_v22  ;;  %v1478_v29 = vand.u32 2147483648, %v1466_v22  ;;  %v1476_v31 = vand.u32 2147483647, %v1466_v22  ;;  %vm1472_vm1 = vweird.f32 %v1466_v22 }
 0x271   :  { %v1479_v33 = vor.u32 1.1754944e-38, %v1478_v29  ;;  %vm1477_vm3 = vcmp.eq.f32.partialorder %v1476_v31, 8.507059e+37 }
 0x275   :  { %v2337_v24 = vpop.eup %2336 }
 0x276   :  { %v1468_v26 = vmul.f32 %v2337_v24, %v1466_v22  ;;  %vm1473_vm0 = vweird.f32 %v2337_v24 }
 0x277   :  { %vm1474_vm2 = vmor %vm1472_vm1, %vm1473_vm0 }
 0x278   :  { %v1469_v27 = vsub.f32 1.0, %v1468_v26 }
 0x27a   :  { %v1470_v30 = vmul.f32 %v2337_v24, %v1469_v27 }
 0x27c   :  { %v1471_v32 = vadd.f32 %v2337_v24, %v1470_v30 }
 0x27e   :  { %v1475_v51 = vsel %vm1474_vm2, %v2337_v24, %v1471_v32 }
 0x27f   :  { %v1480_v34 = vsel %vm1477_vm3, %v1479_v33, %v1475_v51 }
 0x280   :  { %1482 = vst [vmem:[#allocation11] sm:$0xff] %v1480_v34 }
 0x281   :  { %1493 = dma.vmem_to_hbm [thread:$0]  %s1489_s29, 128, %s1491_s8, [#allocation4]  }
 0x282   :  { %2488 = dma.done.wait [#allocation4], 128  }
 0x283   :  { %2489 = vsyncadd [#allocation4], 4294967168 }
 0x284   :  { %1498 = vsyncpa [#allocation3], 1 }
 0x285   :  { %1499 = vsyncpa [#allocation6], 1 }
 0x286   :  { %1500 = vsyncpa [#allocation9], 1 }
 0x287   :  { %1501 = vsyncpa [#allocation4], 1 }

</bundles_post_ra>
